<compile_context>
chip_gen: v7x
topology: tpu7x:2x2x1
jax: 0.10.0
libtpu: 0.0.40
codegen_flags: <defaults>
</compile_context>

<pallas_src>
import jax
import jax.numpy as jnp
import numpy as np
from jax.experimental import pallas as pl
from jax.experimental.pallas import tpu as pltpu


def _cfg_masked_denoiser_kernel(x_ref, mask_ref, x0_ref, wblk_ref,
                                scale_ref, bias_ref, out_ref):
    """One (N*C, lane_tile) slab:  out = x0 + m * ((Wblk@x)*s + biasS - x0)."""
    x = x_ref[...]                                              # (NC, T)

    # Channel mix for every batch at once via the block-diagonal weight.
    # Keeping this on the MXU leaves the (busier) VPU slots for the blend;
    # at C=4 the matmul is trivial either way.
    mixed = jnp.dot(wblk_ref[...], x, preferred_element_type=jnp.float32)

    # Per-row (= per batch,channel) sigma scale and CFG-folded, pre-scaled
    # bias; both are (NC, 1) columns that broadcast along the lane axis.
    denoised = mixed * scale_ref[...] + bias_ref[...]           # (NC, T)

    x0 = x0_ref[...]
    out_ref[...] = x0 + mask_ref[...] * (denoised - x0)


def cfg_masked_denoise(x, sigma, uncond_emb, cond_emb, cond_scale, mask, x0,
                       wc, wp, *, lane_tile=2048):
    """Fused CFGMaskedDenoiser forward.

    x            : (N, C, H, W) float32
    sigma        : (N,) float32
    *_emb        : (N, E) float32
    mask, x0     : broadcastable to x.shape
    wc           : (C, C) channel-mix weight of the synthetic inner model
    wp           : (C, E) conditioning projection of the synthetic inner model
    """
    N, C, H, W = x.shape
    HW = H * W
    NC = N * C

    x = x.astype(jnp.float32)
    mask = jnp.broadcast_to(mask, x.shape).astype(jnp.float32)
    x0 = jnp.broadcast_to(x0, x.shape).astype(jnp.float32)

    # ---- tiny per-batch precompute (pure XLA, O(N*(C+E)) work) ------------
    s = jax.lax.rsqrt(sigma.astype(jnp.float32) ** 2 + 1.0)          # (N,)
    # CFG folded into the conditioning before projection (algebraically exact):
    emb_eff = uncond_emb + cond_scale * (cond_emb - uncond_emb)      # (N, E)
    bias_eff = emb_eff @ wp.T                                        # (N, C)

    scale_col = jnp.repeat(s, C).reshape(NC, 1)                      # (NC, 1)
    bias_col = (bias_eff * s[:, None]).reshape(NC, 1)                # (NC, 1)

    # Block-diagonal weight: one matmul mixes channels of every batch while the
    # sublane axis (N*C = 8) fully fills each vreg.
    wblk = jnp.kron(jnp.eye(N, dtype=jnp.float32), wc.astype(jnp.float32))

    x_2d = x.reshape(NC, HW)
    mask_2d = mask.reshape(NC, HW)
    x0_2d = x0.reshape(NC, HW)

    # Lane-axis tiling: one block at toy sizes, pipelined tiles at real sizes.
    tile = HW if HW <= lane_tile else lane_tile
    assert HW % tile == 0, "H*W must tile evenly on the lane axis"
    grid = (HW // tile,)

    big = pl.BlockSpec((NC, tile), lambda j: (0, j))
    col = pl.BlockSpec((NC, 1), lambda j: (0, 0))

    out = pl.pallas_call(
        _cfg_masked_denoiser_kernel,
        out_shape=jax.ShapeDtypeStruct((NC, HW), jnp.float32),
        grid=grid,
        in_specs=[
            big,                                          # x
            big,                                          # mask
            big,                                          # x0
            pl.BlockSpec((NC, NC), lambda j: (0, 0)),     # block-diag weight
            col,                                          # per-row sigma scale
            col,                                          # per-row bias*s
        ],
        out_specs=big,
        compiler_params=pltpu.CompilerParams(
            dimension_semantics=("parallel",)),
    )(x_2d, mask_2d, x0_2d, wblk, scale_col, bias_col)

    return out.reshape(N, C, H, W)


def _reference(x, sigma, uncond_emb, cond_emb, cond_scale, mask, x0, wc, wp):
    """Pure-JAX reference mirroring the PyTorch forward (unfused order)."""
    N, C, H, W = x.shape
    x_flat = x.reshape(N, C, H * W)

    def inner(x_in, sigma_in, cond_in):
        s = 1.0 / jnp.sqrt(sigma_in ** 2 + 1.0)              # (2N,)
        mixed = jnp.einsum("cd,ndp->ncp", wc, x_in)          # (2N, C, HW)
        bias = jnp.einsum("ce,ne->nc", wp, cond_in)          # (2N, C)
        return (mixed + bias[:, :, None]) * s[:, None, None]

    x_in = jnp.concatenate([x_flat] * 2)
    sigma_in = jnp.concatenate([sigma] * 2)
    cond_in = jnp.concatenate([uncond_emb, cond_emb])
    out = inner(x_in, sigma_in, cond_in)
    uncond_o, cond_o = out[:N], out[N:]
    denoised = uncond_o + (cond_o - uncond_o) * cond_scale
    denoised = denoised.reshape(N, C, H, W)
    return x0 * (1.0 - mask) + mask * denoised


if __name__ == "__main__":
    N, C, H, W, E = 2, 4, 16, 16, 32
    cond_scale = 7.5

    key = jax.random.PRNGKey(0)
    k = jax.random.split(key, 8)
    x = jax.random.normal(k[0], (N, C, H, W), jnp.float32)
    sigma = jax.random.uniform(k[1], (N,), jnp.float32, 0.1, 2.0)
    uncond_emb = jax.random.normal(k[2], (N, E), jnp.float32)
    cond_emb = jax.random.normal(k[3], (N, E), jnp.float32)
    mask = (jax.random.uniform(k[4], (N, C, H, W), jnp.float32) > 0.5
            ).astype(jnp.float32)
    x0 = jax.random.normal(k[5], (N, C, H, W), jnp.float32)
    # deterministic synthetic "inner model" parameters
    wc = jax.random.normal(k[6], (C, C), jnp.float32) * 0.5
    wp = jax.random.normal(k[7], (C, E), jnp.float32) * 0.1

    out = cfg_masked_denoise(x, sigma, uncond_emb, cond_emb, cond_scale,
                             mask, x0, wc, wp)
    out = jax.block_until_ready(out)

    ref = _reference(x, sigma, uncond_emb, cond_emb, cond_scale, mask, x0,
                     wc, wp)
    np.testing.assert_allclose(np.asarray(out), np.asarray(ref),
                               rtol=1e-5, atol=1e-4)
    print("KERNEL_OK")
</pallas_src>

<mosaic_0001>
module attributes {stable_mosaic.version = 11 : i64} {
  func.func @_cfg_masked_denoiser_kernel(%arg0: i32, %arg1: memref<8x256xf32, #tpu.memory_space<vmem>>, %arg2: memref<8x256xf32, #tpu.memory_space<vmem>>, %arg3: memref<8x256xf32, #tpu.memory_space<vmem>>, %arg4: memref<8x8xf32, #tpu.memory_space<vmem>>, %arg5: memref<8x1xf32, #tpu.memory_space<vmem>>, %arg6: memref<8x1xf32, #tpu.memory_space<vmem>>, %arg7: memref<8x256xf32, #tpu.memory_space<vmem>>) attributes {dimension_semantics = [#tpu.dimension_semantics<parallel>], iteration_bounds = array<i64: 1>, scalar_prefetch = 0 : i64, scratch_operands = 0 : i64, tpu.core_type = #tpu.core_type<tc>, window_params = [{transform_indices = @transform_0, window_bounds = array<i64: 8, 256>}, {transform_indices = @transform_1, window_bounds = array<i64: 8, 256>}, {transform_indices = @transform_2, window_bounds = array<i64: 8, 256>}, {pipeline_mode = #tpu.pipeline_mode<synchronous>, transform_indices = @transform_3, window_bounds = array<i64: 8, 8>}, {pipeline_mode = #tpu.pipeline_mode<synchronous>, transform_indices = @transform_4, window_bounds = array<i64: 8, 1>}, {pipeline_mode = #tpu.pipeline_mode<synchronous>, transform_indices = @transform_5, window_bounds = array<i64: 8, 1>}, {transform_indices = @transform_6, window_bounds = array<i64: 8, 256>}]} {
    %c0 = arith.constant 0 : index
    %c0_0 = arith.constant 0 : index
    %0 = vector.load %arg1[%c0, %c0_0] : memref<8x256xf32, #tpu.memory_space<vmem>>, vector<8x256xf32>
    %c0_1 = arith.constant 0 : index
    %c0_2 = arith.constant 0 : index
    %1 = vector.load %arg4[%c0_1, %c0_2] : memref<8x8xf32, #tpu.memory_space<vmem>>, vector<8x8xf32>
    %cst = arith.constant dense<0.000000e+00> : vector<8x256xf32>
    %2 = tpu.matmul %1, %0, %cst {dimension_numbers = #tpu.dot_dimension_numbers<[1], [0], [0], [1], [0, 0, 1, 1], [], []>} : vector<8x8xf32>, vector<8x256xf32>, vector<8x256xf32> -> vector<8x256xf32>
    %c0_3 = arith.constant 0 : index
    %c0_4 = arith.constant 0 : index
    %3 = vector.load %arg5[%c0_3, %c0_4] : memref<8x1xf32, #tpu.memory_space<vmem>>, vector<8x1xf32>
    %4 = vector.broadcast %3 : vector<8x1xf32> to vector<8x256xf32>
    %5 = arith.mulf %2, %4 : vector<8x256xf32>
    %c0_5 = arith.constant 0 : index
    %c0_6 = arith.constant 0 : index
    %6 = vector.load %arg6[%c0_5, %c0_6] : memref<8x1xf32, #tpu.memory_space<vmem>>, vector<8x1xf32>
    %7 = vector.broadcast %6 : vector<8x1xf32> to vector<8x256xf32>
    %8 = arith.addf %5, %7 : vector<8x256xf32>
    %c0_7 = arith.constant 0 : index
    %c0_8 = arith.constant 0 : index
    %9 = vector.load %arg3[%c0_7, %c0_8] : memref<8x256xf32, #tpu.memory_space<vmem>>, vector<8x256xf32>
    %c0_9 = arith.constant 0 : index
    %c0_10 = arith.constant 0 : index
    %10 = vector.load %arg2[%c0_9, %c0_10] : memref<8x256xf32, #tpu.memory_space<vmem>>, vector<8x256xf32>
    %11 = arith.subf %8, %9 : vector<8x256xf32>
    %12 = arith.mulf %10, %11 : vector<8x256xf32>
    %13 = arith.addf %9, %12 : vector<8x256xf32>
    %c0_11 = arith.constant 0 : index
    %c0_12 = arith.constant 0 : index
    %14 = vector.load %arg7[%c0_11, %c0_12] : memref<8x256xf32, #tpu.memory_space<vmem>>, vector<8x256xf32>
    tpu.vector_store %arg7[%c0_11, %c0_12], %13 {strides = array<i32>} : memref<8x256xf32, #tpu.memory_space<vmem>>, vector<8x256xf32>,
    return
  }
  func.func @transform_0(%arg0: i32) -> (i32, i32) {
    %c0_i32 = arith.constant 0 : i32
    %c0_i32_0 = arith.constant 0 : i32
    return %c0_i32, %arg0 : i32, i32
  }
  func.func @transform_1(%arg0: i32) -> (i32, i32) {
    %c0_i32 = arith.constant 0 : i32
    %c0_i32_0 = arith.constant 0 : i32
    return %c0_i32, %arg0 : i32, i32
  }
  func.func @transform_2(%arg0: i32) -> (i32, i32) {
    %c0_i32 = arith.constant 0 : i32
    %c0_i32_0 = arith.constant 0 : i32
    return %c0_i32, %arg0 : i32, i32
  }
  func.func @transform_3(%arg0: i32) -> (i32, i32) {
    %c0_i32 = arith.constant 0 : i32
    %c0_i32_0 = arith.constant 0 : i32
    %c0_i32_1 = arith.constant 0 : i32
    return %c0_i32, %c0_i32_0 : i32, i32
  }
  func.func @transform_4(%arg0: i32) -> (i32, i32) {
    %c0_i32 = arith.constant 0 : i32
    %c0_i32_0 = arith.constant 0 : i32
    %c0_i32_1 = arith.constant 0 : i32
    return %c0_i32, %c0_i32_0 : i32, i32
  }
  func.func @transform_5(%arg0: i32) -> (i32, i32) {
    %c0_i32 = arith.constant 0 : i32
    %c0_i32_0 = arith.constant 0 : i32
    %c0_i32_1 = arith.constant 0 : i32
    return %c0_i32, %c0_i32_0 : i32, i32
  }
  func.func @transform_6(%arg0: i32) -> (i32, i32) {
    %c0_i32 = arith.constant 0 : i32
    %c0_i32_0 = arith.constant 0 : i32
    return %c0_i32, %arg0 : i32, i32
  }
}

</mosaic_0001>

<bundles_post_ra>
// kernel: tpu_custom_call.1
= control target key start
LH: loop header
LB: loop body
LE: loop exit
PB: predicated region body
PF: predicated region fallthrough
CT: control target
= control target key end

     0   :  { %11 = vsyncpa [#allocation3], 0  ;;  %s340_s0 = inlined_call_operand.vmem [shape: f32[8,256], index: 0, kind: input, shape index: {}]   ;;  %s341_s1 = inlined_call_operand.hbm [shape: f32[8,256], index: 1, kind: input, shape index: {}]   ;;  %s342_s2 = inlined_call_operand.hbm [shape: f32[8,256], index: 2, kind: input, shape index: {}]   ;;  %s343_s3 = inlined_call_operand.vmem [shape: f32[8,8], index: 3, kind: input, shape index: {}]   ;;  %s344_s4 = inlined_call_operand.vmem [shape: f32[8,1], index: 4, kind: input, shape index: {}]   ;;  %s345_s5 = inlined_call_operand.vmem [shape: f32[8,1], index: 5, kind: input, shape index: {}]   ;;  %s346_s6 = inlined_call_operand.hbm [shape: f32[8,256], index: 6, kind: output, shape index: {}]  }
   0x1   :  { %12 = vsyncpa [#allocation6], 0 }
   0x2   :  { %13 = vsyncpa [#allocation4], 0  ;;  %s249_s21 = smov [#allocation2]   ;;  %s250_s23 = smov [#allocation5]  }
   0x3   :  { %s22_s22 = sshll.u32 %s249_s21, 4  ;;  %s32_s24 = sshll.u32 %s250_s23, 4  ;;  %s23_s22 = int_to_ptr.vmem [resolvable:$true] %s22_s22  ;;  %s33_s24 = int_to_ptr.vmem [resolvable:$true] %s32_s24 }
   0x4   :  { %s177_s27 = scalar_lea.hbm %s341_s1, 256 }
   0x5   :  { %p178_p0 = scmp.ne.s32.totalorder %s341_s1, %s177_s27  ;;  %p181_p1 = scmp.lt.u32.totalorder %s177_s27, %s341_s1 }
   0x7   :  { %p183_p2 = pnand %p181_p1, %p178_p0 }
   0x9   :  { %186 = shalt.err (!%p183_p2)
}
   0xa   :  { %s187_s8 = scalar_lea.vmem %s23_s22, 256  ;;  %p192_p4 = scmp.lt.s32.totalorder %s23_s22, %s23_s22 }
   0xb   :  { %p188_p3 = scmp.ne.s32.totalorder %s23_s22, %s187_s8  ;;  %p193_p5 = scmp.lt.s32.totalorder %s187_s8, %s187_s8 }
   0xd   :  { %p194_p6 = por %p193_p5, %p192_p4 }
   0xf   :  { %p195_p7 = pnand %p194_p6, %p188_p3 }
  0x11   :  { %198 = shalt.err (!%p195_p7)
}
  0x12   :  { %25 = dma.hbm_to_vmem [thread:$0]  %s341_s1, 256, %s23_s22, [#allocation3]  }
  0x13   :  { %s199_s13 = scalar_lea.hbm %s342_s2, 256 }
  0x14   :  { %p200_p8 = scmp.ne.s32.totalorder %s342_s2, %s199_s13  ;;  %p203_p9 = scmp.lt.u32.totalorder %s199_s13, %s342_s2 }
  0x16   :  { %p205_p10 = pnand %p203_p9, %p200_p8 }
  0x18   :  { %208 = shalt.err (!%p205_p10)
}
  0x19   :  { %s209_s18 = scalar_lea.vmem %s33_s24, 256  ;;  %p214_p12 = scmp.lt.s32.totalorder %s33_s24, %s33_s24 }
  0x1a   :  { %p210_p11 = scmp.ne.s32.totalorder %s33_s24, %s209_s18  ;;  %p215_p13 = scmp.lt.s32.totalorder %s209_s18, %s209_s18 }
  0x1c   :  { %p216_p0 = por %p215_p13, %p214_p12 }
  0x1e   :  { %p217_p1 = pnand %p216_p0, %p210_p11 }
  0x20   :  { %220 = shalt.err (!%p217_p1)
}
  0x21   :  { %35 = dma.hbm_to_vmem [thread:$0]  %s342_s2, 256, %s33_s24, [#allocation6]  }
  0x22   :  { %243 = dma.done.wait [#allocation3], 256  }
  0x23   :  { %244 = vsyncadd [#allocation3], 4294967040 }
  0x24   :  { %245 = dma.done.wait [#allocation6], 256  }
  0x25   :  { %246 = vsyncadd [#allocation6], 4294967040  ;;  %v251_v0 = vmov 0.0   ;;  %v252_v1 = vmov 0   ;;  %v49_v2 = vld [vmem:[%s340_s0 + $0x8] sm:$0xff]  ;;  %v48_v3 = vld [vmem:[%s340_s0] sm:$0xff] }
  0x26   :  { %119 = vmatprep.mubr.f32.mxu0 %v251_v0  ;;  %176 = vset.pattern.permute.xlu0 %v252_v1  ;;  %v50_v4 = vld [vmem:[%s343_s3] sm:$0xff]  ;;  %vm51_vm0 = vcmask 64512   ;;  %v142_v12 = vld [vmem:[#allocation5] sm:$0xff]  ;;  %v143_v15 = vld [vmem:[#allocation5 + $0x8] sm:$0xff]  ;;  %s253_s0 = smov [#allocation7]  }
  0x27   :  { %55 = vmatprep.subr.mxu0 %v49_v2  ;;  %v126_v5 = vld [vmem:[%s344_s4] sm:$0xff]  ;;  %v145_v19 = vld [vmem:[#allocation2 + $0x8] sm:$0xff]  ;;  %s160_s3 = sshll.u32 %s253_s0, 4  ;;  %s161_s3 = int_to_ptr.vmem [resolvable:$true] %s160_s3 }
  0x28   :  { %56 = vmatpush1.msra.mxu0 %v48_v3  ;;  %129 = vperm.xlu0 %176, %v126_v5   ;;  %v134_v6 = vld [vmem:[%s345_s5] sm:$0xff]  ;;  %s221_s4 = scalar_lea.vmem %s161_s3, 256  ;;  %p226_p3 = scmp.lt.s32.totalorder %s161_s3, %s161_s3 }
  0x29   :  { %170 = vmatmul.mubr.msk.f32.vlgmr.msra.gmra.mrb[0].mxu0 %vm51_vm0, %v50_v4  ;;  %v144_v16 = vld [vmem:[#allocation2] sm:$0xff]  ;;  %p222_p2 = scmp.ne.s32.totalorder %s161_s3, %s221_s4  ;;  %p227_p4 = scmp.lt.s32.totalorder %s221_s4, %s221_s4 }
  0x2b   :  { %p228_p5 = por %p227_p4, %p226_p3 }
  0x2c   :  { %137 = vperm.xlu0 %176, %v134_v6  }
  0x2d   :  { %p229_p6 = pnand %p228_p5, %p222_p2 }
  0xa7   :  { %v130_v7 = vpop.permute.xlu0 %129 }
  0xab   :  { %v138_v11 = vpop.permute.xlu0 %137 }
  0xfc   :  { %v121_v8 = vpop.f32.mrb[0].mxu0 }
  0xfd   :  { %v132_v9 = vmul.f32 %v130_v7, %v121_v8  ;;  %v123_v10 = vpop.f32.mrb[1].mxu0 }
  0xfe   :  { %v133_v13 = vmul.f32 %v130_v7, %v123_v10 }
  0xff   :  { %v140_v14 = vadd.f32 %v138_v11, %v132_v9 }
 0x100   :  { %v141_v17 = vadd.f32 %v138_v11, %v133_v13 }
 0x101   :  { %v146_v18 = vsub.f32 %v140_v14, %v142_v12 }
 0x102   :  { %v147_v20 = vsub.f32 %v141_v17, %v143_v15 }
 0x103   :  { %v148_v21 = vmul.f32 %v146_v18, %v144_v16 }
 0x104   :  { %v149_v22 = vmul.f32 %v147_v20, %v145_v19 }
 0x105   :  { %v150_v23 = vadd.f32 %v148_v21, %v142_v12 }
 0x106   :  { %v151_v24 = vadd.f32 %v149_v22, %v143_v15 }
 0x107   :  { %152 = vst [vmem:[#allocation7] sm:$0xff] %v150_v23 }
 0x108   :  { %153 = vst [vmem:[#allocation7 + $0x8] sm:$0xff] %v151_v24 }
 0x109   :  { %232 = shalt.err (!%p229_p6)
}
 0x10a   :  { %s233_s30 = scalar_lea.hbm %s346_s6, 256 }
 0x10b   :  { %p234_p7 = scmp.ne.s32.totalorder %s346_s6, %s233_s30  ;;  %p237_p8 = scmp.lt.u32.totalorder %s233_s30, %s346_s6 }
 0x10d   :  { %p239_p9 = pnand %p237_p8, %p234_p7 }
 0x10f   :  { %242 = shalt.err (!%p239_p9)
}
 0x110   :  { %163 = dma.vmem_to_hbm [thread:$0]  %s161_s3, 256, %s346_s6, [#allocation4]  }
 0x111   :  { %247 = dma.done.wait [#allocation4], 256  }
 0x112   :  { %248 = vsyncadd [#allocation4], 4294967040 }
 0x113   :  { %167 = vsyncpa [#allocation3], 1 }
 0x114   :  { %168 = vsyncpa [#allocation6], 1 }
 0x115   :  { %169 = vsyncpa [#allocation4], 1 }

</bundles_post_ra>
